<compile_context>
chip_gen: v5e
topology: v5e:2x2
jax: 0.10.0
libtpu: 0.0.40
codegen_flags: <defaults>
</compile_context>

<pallas_src>
import functools

import jax
import jax.numpy as jnp
from jax import lax
from jax.experimental import pallas as pl
from jax.experimental.pallas import tpu as pltpu

LANES = 128
MAX_TILE_ROWS = 1024  # 512 KiB per f32 input tile


def _focal_reduce_kernel(pred_ref, gt_ref, out_ref, loss_acc, pos_acc, *,
                         rows, tile_rows, needs_mask):
    i = pl.program_id(0)

    @pl.when(i == 0)
    def _():
        loss_acc[...] = jnp.zeros_like(loss_acc)
        pos_acc[...] = jnp.zeros_like(pos_acc)

    pred = pred_ref[...].astype(jnp.float32)
    gt = gt_ref[...].astype(jnp.float32)

    if needs_mask:
        # Rows past `rows` (partial last block) may contain garbage; neutralize
        # BEFORE the log so 0 * NaN / 0 * inf cannot appear.
        row_ids = lax.broadcasted_iota(jnp.int32, pred.shape, 0)
        valid = (i * tile_rows + row_ids) < rows
        pred = jnp.where(valid, pred, 0.5)
        gt = jnp.where(valid, gt, 2.0)

    is_pos = gt == 1.0
    is_neg = gt < 1.0

    one_m_pred = 1.0 - pred
    one_m_gt = 1.0 - gt
    gt4 = one_m_gt * one_m_gt
    gt4 = gt4 * gt4  # (1 - gt)^4

    # pos / neg indicators are mutually exclusive -> a single log per element.
    z = jnp.where(is_pos, pred, one_m_pred)
    logz = jnp.log(z)
    w = jnp.where(is_pos, one_m_pred * one_m_pred,
                  jnp.where(is_neg, pred * pred * gt4, 0.0))

    # Pure VPU accumulation; fully hidden under the input DMA.
    loss_acc[...] += logz * w
    pos_acc[...] += is_pos.astype(jnp.float32)

    # One cross-lane reduction + SMEM store at the very end only.
    @pl.when(i == pl.num_programs(0) - 1)
    def _():
        out_ref[0] = jnp.sum(loss_acc[...])
        out_ref[1] = jnp.sum(pos_acc[...])


@jax.jit
def focal_loss(pred, gt):
    """CornerNet modified focal loss. pred, gt: (B, C, H, W)."""
    assert pred.shape == gt.shape
    total = 1
    for d in pred.shape:
        total *= d

    pred_flat = pred.reshape(-1).astype(jnp.float32)
    gt_flat = gt.reshape(-1).astype(jnp.float32)

    lane_pad = (-total) % LANES
    if lane_pad:
        # Rare fallback (total not a multiple of 128): tiny neutral pad so the
        # lane-dense reshape is possible. pred=0.5 / gt=2.0 contribute exactly
        # zero to every partial sum (finite log, both indicators zero).
        pred_flat = jnp.concatenate(
            [pred_flat, jnp.full((lane_pad,), 0.5, jnp.float32)])
        gt_flat = jnp.concatenate(
            [gt_flat, jnp.full((lane_pad,), 2.0, jnp.float32)])

    rows = (total + lane_pad) // LANES
    pred2d = pred_flat.reshape(rows, LANES)
    gt2d = gt_flat.reshape(rows, LANES)

    if rows <= MAX_TILE_ROWS:
        tile_rows = rows  # block == full array extent (always legal)
    else:
        tile_rows = MAX_TILE_ROWS  # multiple of 8
    n_blocks = pl.cdiv(rows, tile_rows)
    needs_mask = (rows % tile_rows) != 0

    kernel = functools.partial(_focal_reduce_kernel, rows=rows,
                               tile_rows=tile_rows, needs_mask=needs_mask)

    sums = pl.pallas_call(
        kernel,
        out_shape=jax.ShapeDtypeStruct((2,), jnp.float32),
        grid_spec=pltpu.PrefetchScalarGridSpec(
            num_scalar_prefetch=0,
            grid=(n_blocks,),
            in_specs=[
                pl.BlockSpec((tile_rows, LANES), lambda i: (i, 0)),
                pl.BlockSpec((tile_rows, LANES), lambda i: (i, 0)),
            ],
            out_specs=pl.BlockSpec(memory_space=pltpu.SMEM),
            scratch_shapes=[
                pltpu.VMEM((tile_rows, LANES), jnp.float32),
                pltpu.VMEM((tile_rows, LANES), jnp.float32),
            ],
        ),
        compiler_params=pltpu.CompilerParams(
            dimension_semantics=("arbitrary",)),
    )(pred2d, gt2d)

    loss_sum = sums[0]
    num_pos = sums[1]
    # num_pos == 0 implies the pos-loss sum is exactly 0, so this single
    # expression reproduces both branches of the PyTorch reference.
    return -loss_sum / jnp.maximum(num_pos, 1.0)


def _focal_loss_ref(pred, gt):
    """Pure-JAX reference mirroring the PyTorch code."""
    pred = pred.astype(jnp.float32)
    gt = gt.astype(jnp.float32)
    pos_inds = (gt == 1.0).astype(jnp.float32)
    neg_inds = (gt < 1.0).astype(jnp.float32)
    neg_weights = (1.0 - gt) ** 4
    pos_loss = jnp.log(pred) * (1.0 - pred) ** 2 * pos_inds
    neg_loss = jnp.log(1.0 - pred) * pred ** 2 * neg_weights * neg_inds
    num_pos = pos_inds.sum()
    pos_loss = pos_loss.sum()
    neg_loss = neg_loss.sum()
    return jnp.where(num_pos == 0.0, -neg_loss,
                     -(pos_loss + neg_loss) / jnp.where(num_pos == 0.0, 1.0, num_pos))


if __name__ == "__main__":
    key = jax.random.PRNGKey(0)
    k1, k2 = jax.random.split(key)

    # Primary check: the module's natural small shape.
    B, C, H, W = 2, 4, 16, 16
    pred = jax.random.uniform(k1, (B, C, H, W), jnp.float32,
                              minval=1e-4, maxval=1.0 - 1e-4)
    gt = jax.random.uniform(k2, (B, C, H, W), jnp.float32)
    gt = jnp.where(gt > 0.95, 1.0, gt * 0.9)

    out = focal_loss(pred, gt)
    jax.block_until_ready(out)
    ref = _focal_loss_ref(pred, gt)
    assert jnp.allclose(out, ref, rtol=1e-5, atol=1e-5), (out, ref)

    # Secondary check: exercises multi-block grid + in-kernel row-tail masking
    # (rows = 1040 > MAX_TILE_ROWS, not a multiple of the tile).
    k3, k4 = jax.random.split(jax.random.PRNGKey(1))
    pred2 = jax.random.uniform(k3, (2, 4, 128, 130), jnp.float32,
                               minval=1e-4, maxval=1.0 - 1e-4)
    gt2 = jax.random.uniform(k4, (2, 4, 128, 130), jnp.float32)
    gt2 = jnp.where(gt2 > 0.97, 1.0, gt2 * 0.9)
    out2 = focal_loss(pred2, gt2)
    jax.block_until_ready(out2)
    ref2 = _focal_loss_ref(pred2, gt2)
    assert jnp.allclose(out2, ref2, rtol=1e-5, atol=1e-5), (out2, ref2)

    print("KERNEL_OK")
</pallas_src>

<mosaic_0001>
module attributes {stable_mosaic.version = 11 : i64} {
  func.func @_focal_reduce_kernel(%arg0: i32, %arg1: memref<16x128xf32, #tpu.memory_space<vmem>>, %arg2: memref<16x128xf32, #tpu.memory_space<vmem>>, %arg3: memref<2xf32, #tpu.memory_space<smem>>, %arg4: memref<16x128xf32, #tpu.memory_space<vmem>>, %arg5: memref<16x128xf32, #tpu.memory_space<vmem>>) attributes {dimension_semantics = [#tpu.dimension_semantics<arbitrary>], iteration_bounds = array<i64: 1>, scalar_prefetch = 0 : i64, scratch_operands = 2 : i64, tpu.core_type = #tpu.core_type<tc>, window_params = [{transform_indices = @transform_0, window_bounds = array<i64: 16, 128>}, {transform_indices = @transform_1, window_bounds = array<i64: 16, 128>}, {transform_indices = @transform_2, window_bounds = array<i64: 2>}]} {
    %c0_i32 = arith.constant 0 : i32
    %0 = arith.cmpi eq, %arg0, %c0_i32 : i32
    %1 = arith.extui %0 : i1 to i32
    %c0_i32_0 = arith.constant 0 : i32
    %2 = arith.cmpi ne, %1, %c0_i32_0 : i32
    scf.if %2 {
      %cst_18 = arith.constant 0.000000e+00 : f32
      %35 = vector.broadcast %cst_18 : f32 to vector<16x128xf32>
      %c0_19 = arith.constant 0 : index
      %c0_20 = arith.constant 0 : index
      %36 = vector.load %arg4[%c0_19, %c0_20] : memref<16x128xf32, #tpu.memory_space<vmem>>, vector<16x128xf32>
      tpu.vector_store %arg4[%c0_19, %c0_20], %35 {strides = array<i32>} : memref<16x128xf32, #tpu.memory_space<vmem>>, vector<16x128xf32>,
      %cst_21 = arith.constant 0.000000e+00 : f32
      %37 = vector.broadcast %cst_21 : f32 to vector<16x128xf32>
      %c0_22 = arith.constant 0 : index
      %c0_23 = arith.constant 0 : index
      %38 = vector.load %arg5[%c0_22, %c0_23] : memref<16x128xf32, #tpu.memory_space<vmem>>, vector<16x128xf32>
      tpu.vector_store %arg5[%c0_22, %c0_23], %37 {strides = array<i32>} : memref<16x128xf32, #tpu.memory_space<vmem>>, vector<16x128xf32>,
    } else {
    }
    %c0 = arith.constant 0 : index
    %c0_1 = arith.constant 0 : index
    %3 = vector.load %arg1[%c0, %c0_1] : memref<16x128xf32, #tpu.memory_space<vmem>>, vector<16x128xf32>
    %c0_2 = arith.constant 0 : index
    %c0_3 = arith.constant 0 : index
    %4 = vector.load %arg2[%c0_2, %c0_3] : memref<16x128xf32, #tpu.memory_space<vmem>>, vector<16x128xf32>
    %cst = arith.constant 1.000000e+00 : f32
    %5 = vector.broadcast %cst : f32 to vector<16x128xf32>
    %6 = arith.cmpf oeq, %4, %5 : vector<16x128xf32>
    %cst_4 = arith.constant 1.000000e+00 : f32
    %7 = vector.broadcast %cst_4 : f32 to vector<16x128xf32>
    %8 = arith.cmpf olt, %4, %7 : vector<16x128xf32>
    %cst_5 = arith.constant 1.000000e+00 : f32
    %9 = vector.broadcast %cst_5 : f32 to vector<16x128xf32>
    %10 = arith.subf %9, %3 : vector<16x128xf32>
    %cst_6 = arith.constant 1.000000e+00 : f32
    %11 = vector.broadcast %cst_6 : f32 to vector<16x128xf32>
    %12 = arith.subf %11, %4 : vector<16x128xf32>
    %13 = arith.mulf %12, %12 : vector<16x128xf32>
    %14 = arith.mulf %13, %13 : vector<16x128xf32>
    %15 = arith.select %6, %3, %10 : vector<16x128xi1>, vector<16x128xf32>
    %16 = math.log %15 : vector<16x128xf32>
    %17 = arith.mulf %10, %10 : vector<16x128xf32>
    %18 = arith.mulf %3, %3 : vector<16x128xf32>
    %19 = arith.mulf %18, %14 : vector<16x128xf32>
    %cst_7 = arith.constant 0.000000e+00 : f32
    %20 = vector.broadcast %cst_7 : f32 to vector<16x128xf32>
    %21 = arith.select %8, %19, %20 : vector<16x128xi1>, vector<16x128xf32>
    %22 = arith.select %6, %17, %21 : vector<16x128xi1>, vector<16x128xf32>
    %c0_8 = arith.constant 0 : index
    %c0_9 = arith.constant 0 : index
    %23 = vector.load %arg4[%c0_8, %c0_9] : memref<16x128xf32, #tpu.memory_space<vmem>>, vector<16x128xf32>
    %24 = arith.mulf %16, %22 : vector<16x128xf32>
    %25 = arith.addf %23, %24 : vector<16x128xf32>
    %c0_10 = arith.constant 0 : index
    %c0_11 = arith.constant 0 : index
    %26 = vector.load %arg4[%c0_10, %c0_11] : memref<16x128xf32, #tpu.memory_space<vmem>>, vector<16x128xf32>
    tpu.vector_store %arg4[%c0_10, %c0_11], %25 {strides = array<i32>} : memref<16x128xf32, #tpu.memory_space<vmem>>, vector<16x128xf32>,
    %c0_12 = arith.constant 0 : index
    %c0_13 = arith.constant 0 : index
    %27 = vector.load %arg5[%c0_12, %c0_13] : memref<16x128xf32, #tpu.memory_space<vmem>>, vector<16x128xf32>
    %28 = arith.extui %6 : vector<16x128xi1> to vector<16x128xi32>
    %29 = arith.sitofp %28 : vector<16x128xi32> to vector<16x128xf32>
    %30 = arith.addf %27, %29 : vector<16x128xf32>
    %c0_14 = arith.constant 0 : index
    %c0_15 = arith.constant 0 : index
    %31 = vector.load %arg5[%c0_14, %c0_15] : memref<16x128xf32, #tpu.memory_space<vmem>>, vector<16x128xf32>
    tpu.vector_store %arg5[%c0_14, %c0_15], %30 {strides = array<i32>} : memref<16x128xf32, #tpu.memory_space<vmem>>, vector<16x128xf32>,
    %c0_i32_16 = arith.constant 0 : i32
    %32 = arith.cmpi eq, %arg0, %c0_i32_16 : i32
    %33 = arith.extui %32 : i1 to i32
    %c0_i32_17 = arith.constant 0 : i32
    %34 = arith.cmpi ne, %33, %c0_i32_17 : i32
    scf.if %34 {
      %c0_18 = arith.constant 0 : index
      %c0_19 = arith.constant 0 : index
      %35 = vector.load %arg4[%c0_18, %c0_19] : memref<16x128xf32, #tpu.memory_space<vmem>>, vector<16x128xf32>
      %36 = vector.shape_cast %35 : vector<16x128xf32> to vector<1x16x128xf32>
      %cst_20 = arith.constant dense<0.000000e+00> : vector<1xf32>
      %37 = vector.multi_reduction <add>, %36, %cst_20 [1, 2] : vector<1x16x128xf32> to vector<1xf32>
      %38 = vector.shape_cast %37 : vector<1xf32> to vector<1x1x1xf32>
      %39 = vector.extract %38[0, 0, 0] : f32 from vector<1x1x1xf32>
      %c0_21 = arith.constant 0 : index
      %40 = memref.load %arg3[%c0_21] : memref<2xf32, #tpu.memory_space<smem>>
      memref.store %39, %arg3[%c0_21] : memref<2xf32, #tpu.memory_space<smem>>
      %c0_22 = arith.constant 0 : index
      %c0_23 = arith.constant 0 : index
      %41 = vector.load %arg5[%c0_22, %c0_23] : memref<16x128xf32, #tpu.memory_space<vmem>>, vector<16x128xf32>
      %42 = vector.shape_cast %41 : vector<16x128xf32> to vector<1x16x128xf32>
      %cst_24 = arith.constant dense<0.000000e+00> : vector<1xf32>
      %43 = vector.multi_reduction <add>, %42, %cst_24 [1, 2] : vector<1x16x128xf32> to vector<1xf32>
      %44 = vector.shape_cast %43 : vector<1xf32> to vector<1x1x1xf32>
      %45 = vector.extract %44[0, 0, 0] : f32 from vector<1x1x1xf32>
      %c1 = arith.constant 1 : index
      %46 = memref.load %arg3[%c1] : memref<2xf32, #tpu.memory_space<smem>>
      memref.store %45, %arg3[%c1] : memref<2xf32, #tpu.memory_space<smem>>
    } else {
    }
    return
  }
  func.func @transform_0(%arg0: i32) -> (i32, i32) {
    %c0_i32 = arith.constant 0 : i32
    %c0_i32_0 = arith.constant 0 : i32
    return %arg0, %c0_i32 : i32, i32
  }
  func.func @transform_1(%arg0: i32) -> (i32, i32) {
    %c0_i32 = arith.constant 0 : i32
    %c0_i32_0 = arith.constant 0 : i32
    return %arg0, %c0_i32 : i32, i32
  }
  func.func @transform_2(%arg0: i32) -> i32 {
    %c0_i32 = arith.constant 0 : i32
    %c0_i32_0 = arith.constant 0 : i32
    return %c0_i32 : i32
  }
}

</mosaic_0001>

<bundles_post_ra>
// kernel: focal_loss.1
= control target key start
LH: loop header
LB: loop body
LE: loop exit
PB: predicated region body
PF: predicated region fallthrough
CT: control target
= control target key end

     0   :  { %s180_s0 = inlined_call_operand.vmem [shape: f32[16,128], index: 0, kind: input, shape index: {}]   ;;  %s181_s1 = inlined_call_operand.vmem [shape: f32[16,128], index: 1, kind: input, shape index: {}]   ;;  %s182_s2 = inlined_call_operand.vmem [shape: f32[2], index: 2, kind: output, shape index: {}]  }
   0x1   :  { %v20_v0 = vld [vmem:[%s180_s0] sm:$0xff]  ;;  %v21_v1 = vld [vmem:[%s180_s0 + $0x8] sm:$0xff] }
   0x2   :  { %v22_v2 = vld [vmem:[%s181_s1] sm:$0xff]  ;;  %v23_v3 = vld [vmem:[%s181_s1 + $0x8] sm:$0xff]  ;;  %v28_v4 = vsub.f32 1.0, %v20_v0  ;;  %v29_v5 = vsub.f32 1.0, %v21_v1 }
   0x3   :  { %vm24_vm0 = vcmp.eq.f32.partialorder %v22_v2, 1.0  ;;  %vm25_vm1 = vcmp.eq.f32.partialorder %v23_v3, 1.0  ;;  %v30_v6 = vsub.f32 1.0, %v22_v2  ;;  %v31_v7 = vsub.f32 1.0, %v23_v3 }
   0x4   :  { %7 = vsyncpa [#allocation5], 0  ;;  %v36_v8 = vsel %vm24_vm0, %v20_v0, %v28_v4  ;;  %v37_v9 = vsel %vm25_vm1, %v21_v1, %v29_v5  ;;  %v44_v12 = vmul.f32 %v20_v0, %v20_v0  ;;  %v45_v13 = vmul.f32 %v21_v1, %v21_v1  ;;  %s106_s18 = sshll.u32 %s182_s2, 4  ;;  %s143_s20 = smov [#allocation4]   ;;  %s107_s18 = int_to_ptr.vmem [resolvable:$true] %s106_s18 }
   0x5   :  { %v32_v10 = vmul.f32 %v30_v6, %v30_v6  ;;  %v33_v11 = vmul.f32 %v31_v7, %v31_v7  ;;  %124 = vlog2.f32 %v36_v8  ;;  %vm26_vm2 = vcmp.lt.f32.partialorder %v22_v2, 1.0 }
   0x6   :  { %126 = vlog2.f32 %v37_v9  ;;  %vm27_vm3 = vcmp.lt.f32.partialorder %v23_v3, 1.0  ;;  %v42_v16 = vmul.f32 %v28_v4, %v28_v4  ;;  %v43_v17 = vmul.f32 %v29_v5, %v29_v5 }
   0x7   :  { %v34_v14 = vmul.f32 %v32_v10, %v32_v10  ;;  %v35_v15 = vmul.f32 %v33_v11, %v33_v11  ;;  %v142_v31 = vmov 0.0  }
   0x8   :  { %v116_v32 = vsel %vm24_vm0, 1.0, %v142_v31  ;;  %v117_v33 = vsel %vm25_vm1, 1.0, %v142_v31 }
   0x9   :  { %v46_v18 = vmul.f32 %v44_v12, %v34_v14  ;;  %v47_v19 = vmul.f32 %v45_v13, %v35_v15  ;;  %v89_v34 = vadd.f32 %v117_v33, %v116_v32 }
   0xb   :  { %v125_v20 = vpop.eup %124  ;;  %v48_v21 = vsel %vm26_vm2, %v46_v18, 0.0  ;;  %v49_v22 = vsel %vm27_vm3, %v47_v19, 0.0 }
   0xc   :  { %v127_v23 = vpop.eup %126  ;;  %v39_v24 = vmul.f32 0.6931472, %v125_v20  ;;  %v50_v25 = vsel %vm24_vm0, %v42_v16, %v48_v21  ;;  %v51_v26 = vsel %vm25_vm1, %v43_v17, %v49_v22 }
   0xd   :  { %v41_v27 = vmul.f32 0.6931472, %v127_v23 }
   0xe   :  { %v54_v28 = vmul.f32 %v50_v25, %v39_v24 }
   0xf   :  { %v55_v29 = vmul.f32 %v51_v26, %v41_v27 }
  0x11   :  { %v75_v30 = vadd.f32 %v55_v29, %v54_v28 }
  0x13   :  { %76 = vadd.xlane.f32.xlu0 %v75_v30 }
  0x1b   :  { %90 = vadd.xlane.f32.xlu0 %v89_v34 }
  0x86   :  { %v77_v35 = vpop.xlane.xlu0 %76 }
  0x87   :  { %v78_v36 = vrot.slane %v77_v35, 4 }
  0x89   :  { %v79_v37 = vadd.f32 %v78_v36, %v77_v35 }
  0x8b   :  { %v80_v38 = vrot.slane %v79_v37, 2 }
  0x8d   :  { %v81_v39 = vadd.f32 %v80_v38, %v79_v37 }
  0x8e   :  { %v91_v40 = vpop.xlane.xlu0 %90 }
  0x8f   :  { %v92_v41 = vrot.slane %v91_v40, 4  ;;  %v82_v42 = vrot.slane %v81_v39, 1 }
  0x91   :  { %v93_v43 = vadd.f32 %v92_v41, %v91_v40  ;;  %v83_v44 = vadd.f32 %v82_v42, %v81_v39 }
  0x93   :  { %v94_v45 = vrot.slane %v93_v43, 2  ;;  %118 = vpush %v83_v44 }
  0x95   :  { %v95_v46 = vadd.f32 %v94_v45, %v93_v43 }
  0x97   :  { %v96_v47 = vrot.slane %v95_v46, 1 }
  0x99   :  { %v97_v48 = vadd.f32 %v96_v47, %v95_v46 }
  0x9b   :  { %120 = vpush %v97_v48 }
  0xc4   :  { %s119_s0 = spop %118 }
  0xc5   :  { %86 = sst [smem:[#allocation4]] %s119_s0 }
  0xcc   :  { %s121_s19 = spop %120 }
  0xcd   :  { %100 = sst [smem:[#allocation4 + $0x1]] %s121_s19 }
  0xce   :  { %109 = dma.smem_to_vmem %s143_s20, 16, %s107_s18, [#allocation5]  }
  0xcf   :  { %140 = dma.done.wait [#allocation5], 16  }
  0xd0   :  { %141 = vsyncadd [#allocation5], 4294967280 }
  0xd1   :  { %114 = sfence }
  0xd2   :  { %115 = vsyncpa [#allocation5], 1 }

</bundles_post_ra>
